<compile_context>
chip_gen: v5e
topology: v5e:2x2
jax: 0.10.0
libtpu: 0.0.40
codegen_flags: <defaults>
</compile_context>

<pallas_src>
import functools

import jax
import jax.numpy as jnp
from jax.experimental import pallas as pl
from jax.experimental.pallas import tpu as pltpu


_MASK_VALUE = -1e30  # large finite: avoids -inf - -inf NaNs in the online softmax


def _round_up(x, m):
    return (x + m - 1) // m * m


def _vmem_limit_bytes():
    cap = 128 * 1024 * 1024
    try:
        cap = int(pltpu.get_tpu_info().vmem_capacity_bytes)
    except Exception:
        pass
    # Leave headroom for Mosaic internal scratch: ~40 MiB on 64-MiB-VMEM parts
    # (v7x), 48 MiB on 128-MiB parts (v5e/v6e).
    return int(min(48 * 1024 * 1024, cap * 5 // 8))


def _default_attn_tile():
    # 256 matches the 2x256^2 MXU on v6e/v7x; 128 matches v5e's 4x128^2 MXU.
    try:
        kind = jax.devices()[0].device_kind.lower()
    except Exception:
        kind = ""
    return 128 if "v5" in kind else 256


# ----------------------------------------------------------------------------
# Linear (matmul + bias) kernel, used for both c_attn and c_proj.
# ----------------------------------------------------------------------------
def _linear_kernel(x_ref, w_ref, b_ref, o_ref):
    acc = jnp.dot(x_ref[...], w_ref[...], preferred_element_type=jnp.float32)
    o_ref[...] = (acc + b_ref[...].astype(jnp.float32)).astype(o_ref.dtype)


def _linear(x2d, w, b, *, tm_max=512):
    """x2d: (M, Cin); w: (Cin, Cout) (already transposed vs torch); b: (Cout,)."""
    M, Cin = x2d.shape
    Cout = w.shape[1]

    tm = min(tm_max, _round_up(M, 8))
    Mp = _round_up(M, tm)
    if Mp != M:
        x2d = jnp.pad(x2d, ((0, Mp - M), (0, 0)))

    itemsize = x2d.dtype.itemsize
    # TODO(synk): for very large n_embd, add a Cout grid axis (tn ~512-1024,
    # lane-dense) and stream (Cin, tn) weight slabs with an f32 accumulator instead
    # of keeping W fully resident; optionally fp8 weights/activations on v7x.
    out = pl.pallas_call(
        _linear_kernel,
        out_shape=jax.ShapeDtypeStruct((Mp, Cout), x2d.dtype),
        grid=(Mp // tm,),
        in_specs=[
            pl.BlockSpec((tm, Cin), lambda i: (i, 0)),          # activation rows
            pl.BlockSpec((Cin, Cout), lambda i: (0, 0),         # resident weight
                         pipeline_mode=pl.Buffered(1)),
            pl.BlockSpec((1, Cout), lambda i: (0, 0),           # resident bias (f32)
                         pipeline_mode=pl.Buffered(1)),
        ],
        out_specs=pl.BlockSpec((tm, Cout), lambda i: (i, 0)),
        compiler_params=pltpu.CompilerParams(
            dimension_semantics=("parallel",),
            vmem_limit_bytes=_vmem_limit_bytes(),
        ),
        cost_estimate=pl.CostEstimate(
            flops=int(2 * Mp * Cin * Cout),
            transcendentals=0,
            bytes_accessed=int((Mp * Cin + Cin * Cout + Mp * Cout) * itemsize
                               + Cout * 4),
        ),
    )(x2d, w, b.reshape(1, Cout).astype(jnp.float32))

    return out[:M] if Mp != M else out


# ----------------------------------------------------------------------------
# Flash attention (causal) kernel: grid = (B, num_q_blocks, num_kv_blocks).
# Q/K/V blocks are (H, tq, D) (all heads per step); output block is (tq, C).
# ----------------------------------------------------------------------------
def _flash_attn_kernel(q_ref, k_ref, v_ref, o_ref, m_sc, l_sc, acc_sc,
                       *, sm_scale, tq, tk):
    qi = pl.program_id(1)
    ki = pl.program_id(2)
    H, _, D = acc_sc.shape

    @pl.when(ki == 0)
    def _init():
        m_sc[...] = jnp.full_like(m_sc, _MASK_VALUE)
        l_sc[...] = jnp.zeros_like(l_sc)
        acc_sc[...] = jnp.zeros_like(acc_sc)

    q_first = qi * tq
    q_last = qi * tq + tq - 1
    k_first = ki * tk
    k_last = ki * tk + tk - 1

    def update(apply_mask):
        q = q_ref[0, 0] * sm_scale                                     # (H, tq, D)
        s = jnp.einsum("hqd,hkd->hqk", q, k_ref[0, 0],
                       preferred_element_type=jnp.float32)             # (H, tq, tk)
        if apply_mask:
            row = q_first + jax.lax.broadcasted_iota(jnp.int32, (1, tq, tk), 1)
            col = k_first + jax.lax.broadcasted_iota(jnp.int32, (1, tq, tk), 2)
            mask = row >= col
            s = jnp.where(mask, s, _MASK_VALUE)

        m_prev = m_sc[...]                                             # (H, tq, 1)
        m_new = jnp.maximum(m_prev, s.max(axis=-1, keepdims=True))
        alpha = jnp.exp(m_prev - m_new)
        p = jnp.exp(s - m_new)
        if apply_mask:
            p = jnp.where(mask, p, 0.0)   # robust even for fully-masked rows
        l_sc[...] = alpha * l_sc[...] + p.sum(axis=-1, keepdims=True)
        acc_sc[...] = alpha * acc_sc[...] + jnp.einsum(
            "hqk,hkd->hqd", p.astype(v_ref.dtype), v_ref[0, 0],
            preferred_element_type=jnp.float32)
        m_sc[...] = m_new

    # Strictly below the diagonal: every (row, col) pair is causal -> no mask work.
    @pl.when(k_last <= q_first)
    def _full_block():
        update(apply_mask=False)

    # Straddles the diagonal: apply the causal mask.  Blocks fully above the
    # diagonal are skipped; their K/V index maps are clamped so no DMA is issued.
    @pl.when((k_last > q_first) & (k_first <= q_last))
    def _diag_block():
        update(apply_mask=True)

    @pl.when(ki == pl.num_programs(2) - 1)
    def _finalize():
        inv_l = pl.reciprocal(l_sc[...], approx=True)                  # (H, tq, 1)
        out = acc_sc[...] * inv_l                                      # (H, tq, D)
        for h in range(H):   # static loop: head h -> its D-column slot of C
            o_ref[0, :, h * D:(h + 1) * D] = out[h].astype(o_ref.dtype)


def _flash_attention_causal(qkv5, *, t_max):
    """qkv5: (3, B, H, T, D) head-major QKV.  Returns attention output (B, T, H*D)."""
    _, B, H, T, D = qkv5.shape
    C = H * D
    sm_scale = float(D) ** -0.5

    t = min(t_max, _round_up(T, 8))
    Tp = _round_up(T, t)
    if Tp != T:
        # Padded KV columns sit past every real query row, so the diagonal-block
        # causal mask removes them; padded query rows are sliced off below.
        qkv5 = jnp.pad(qkv5, ((0, 0), (0, 0), (0, 0), (0, Tp - T), (0, 0)))
    nblk = Tp // t

    def q_map(b, qi, ki):
        return (0, b, 0, qi, 0)

    def kv_map(split):
        def m(b, qi, ki):
            # Clamp to the last causally-needed KV block so skipped (future) blocks
            # keep the same block index -> Pallas issues no new DMA for them.
            last = (qi * t + t - 1) // t      # == qi while tq == tk
            return (split, b, 0, jnp.minimum(ki, last), 0)
        return m

    kernel = functools.partial(_flash_attn_kernel, sm_scale=sm_scale, tq=t, tk=t)
    itemsize = qkv5.dtype.itemsize
    kv_reads = B * H * D * t * (nblk * (nblk + 1) // 2)   # triangular K (=V) traffic
    out = pl.pallas_call(
        kernel,
        out_shape=jax.ShapeDtypeStruct((B, Tp, C), qkv5.dtype),
        grid=(B, nblk, nblk),
        in_specs=[
            pl.BlockSpec((1, 1, H, t, D), q_map),       # Q (all heads)
            pl.BlockSpec((1, 1, H, t, D), kv_map(1)),   # K
            pl.BlockSpec((1, 1, H, t, D), kv_map(2)),   # V
        ],
        out_specs=pl.BlockSpec((1, t, C), lambda b, qi, ki: (b, qi, 0)),
        scratch_shapes=[
            pltpu.VMEM((H, t, 1), jnp.float32),   # running max
            pltpu.VMEM((H, t, 1), jnp.float32),   # running denom
            pltpu.VMEM((H, t, D), jnp.float32),   # f32 output accumulator
        ],
        compiler_params=pltpu.CompilerParams(
            dimension_semantics=("parallel", "parallel", "arbitrary"),
            vmem_limit_bytes=_vmem_limit_bytes(),
        ),
        cost_estimate=pl.CostEstimate(
            flops=int(2 * B * H * Tp * Tp * D),            # ~half of dense (causal)
            transcendentals=int(B * H * Tp * Tp // 2),
            bytes_accessed=int((B * H * Tp * D + 2 * kv_reads + B * Tp * C)
                               * itemsize),
        ),
    )(qkv5, qkv5, qkv5)
    # TODO(synk): stronger variant — flatten (qi, ki) into a 1-D lower-triangular
    # grid via PrefetchScalarGridSpec to also remove the skipped grid steps.

    return out[:, :T, :] if Tp != T else out


# ----------------------------------------------------------------------------
# Full CausalSelfAttention forward.
# ----------------------------------------------------------------------------
def causal_self_attention(x, w_attn, b_attn, w_proj, b_proj, n_head, *,
                          compute_dtype=None, tm=512, t_attn=None):
    """x: (B, T, C); w_attn: (C, 3C); b_attn: (3C,); w_proj: (C, C); b_proj: (C,).

    Weights are stored already transposed vs. torch.nn.Linear (kernels do x @ W + b).
    compute_dtype=jnp.bfloat16 runs the MXU in bf16 with f32 accumulation.
    """
    orig_dtype = x.dtype
    B, T, C = x.shape
    assert C % n_head == 0
    D = C // n_head
    if t_attn is None:
        t_attn = _default_attn_tile()

    if compute_dtype is not None:
        x = x.astype(compute_dtype)
        w_attn = w_attn.astype(compute_dtype)
        w_proj = w_proj.astype(compute_dtype)

    # 1) QKV projection (rows = B*T).
    qkv = _linear(x.reshape(B * T, C), w_attn, b_attn, tm_max=tm)        # (B*T, 3C)

    # Single fused relayout to head-major (3, B, H, T, D); the flash kernel writes
    # its output directly in (B, T, C), so no reverse transpose is needed.
    qkv5 = qkv.reshape(B, T, 3, n_head, D).transpose(2, 0, 3, 1, 4)

    # 2) Causal flash attention, all heads per grid step.
    y = _flash_attention_causal(qkv5, t_max=t_attn)                      # (B, T, C)

    # 3) Output projection.
    out = _linear(y.reshape(B * T, C), w_proj, b_proj, tm_max=tm)
    return out.reshape(B, T, C).astype(orig_dtype)


# ----------------------------------------------------------------------------
# Pure-JAX reference (matches torch forward with is_causal=True SDPA).
# ----------------------------------------------------------------------------
def _reference(x, w_attn, b_attn, w_proj, b_proj, n_head):
    B, T, C = x.shape
    D = C // n_head
    hp = jax.lax.Precision.HIGHEST
    qkv = jnp.dot(x.reshape(B * T, C), w_attn, precision=hp) + b_attn
    qkv = qkv.reshape(B, T, 3, n_head, D)
    q = jnp.transpose(qkv[:, :, 0], (0, 2, 1, 3))
    k = jnp.transpose(qkv[:, :, 1], (0, 2, 1, 3))
    v = jnp.transpose(qkv[:, :, 2], (0, 2, 1, 3))
    s = jnp.einsum("bhqd,bhkd->bhqk", q, k, precision=hp) / jnp.sqrt(jnp.float32(D))
    mask = jnp.tril(jnp.ones((T, T), dtype=bool))
    s = jnp.where(mask[None, None], s, -jnp.inf)
    p = jax.nn.softmax(s, axis=-1)
    y = jnp.einsum("bhqk,bhkd->bhqd", p, v, precision=hp)
    y = jnp.transpose(y, (0, 2, 1, 3)).reshape(B * T, C)
    out = jnp.dot(y, w_proj, precision=hp) + b_proj
    return out.reshape(B, T, C)


if __name__ == "__main__":
    def make_inputs(key, B, T, C):
        kx, kwa, kba, kwp, kbp = jax.random.split(key, 5)
        x = jax.random.normal(kx, (B, T, C), dtype=jnp.float32)
        w_attn = jax.random.normal(kwa, (C, 3 * C), dtype=jnp.float32) * 0.1
        b_attn = jax.random.normal(kba, (3 * C,), dtype=jnp.float32) * 0.1
        w_proj = jax.random.normal(kwp, (C, C), dtype=jnp.float32) * 0.1
        b_proj = jax.random.normal(kbp, (C,), dtype=jnp.float32) * 0.1
        return x, w_attn, b_attn, w_proj, b_proj

    key = jax.random.PRNGKey(0)
    k1, k2 = jax.random.split(key)

    # Case 1: GPTConfig-like small shapes, single attention block (B=2, T=8, C=32, H=4).
    B, T, C, n_head = 2, 8, 32, 4
    x, w_attn, b_attn, w_proj, b_proj = make_inputs(k1, B, T, C)
    out = causal_self_attention(x, w_attn, b_attn, w_proj, b_proj, n_head)
    jax.block_until_ready(out)
    ref = _reference(x, w_attn, b_attn, w_proj, b_proj, n_head)
    assert out.shape == ref.shape
    err1 = float(jnp.max(jnp.abs(out - ref)))
    assert jnp.allclose(out, ref, atol=2e-2, rtol=2e-2), f"case1 max abs diff={err1}"

    # bf16 MXU path (production setting) on the same inputs: run + loose check.
    out_bf16 = causal_self_attention(x, w_attn, b_attn, w_proj, b_proj, n_head,
                                     compute_dtype=jnp.bfloat16)
    jax.block_until_ready(out_bf16)
    assert bool(jnp.all(jnp.isfinite(out_bf16)))
    assert jnp.allclose(out_bf16, ref, atol=1e-1, rtol=1e-1)

    # Case 2: multi-block causal path with sequence padding (T=40, tile=16 -> Tp=48):
    # exercises the unmasked fast path, the diagonal masked path, the clamped K/V
    # index maps for skipped blocks, and padded query/key positions.
    B2, T2, C2, n_head2 = 2, 40, 32, 4
    x2, wa2, ba2, wp2, bp2 = make_inputs(k2, B2, T2, C2)
    out2 = causal_self_attention(x2, wa2, ba2, wp2, bp2, n_head2, t_attn=16)
    jax.block_until_ready(out2)
    ref2 = _reference(x2, wa2, ba2, wp2, bp2, n_head2)
    err2 = float(jnp.max(jnp.abs(out2 - ref2)))
    assert jnp.allclose(out2, ref2, atol=2e-2, rtol=2e-2), f"case2 max abs diff={err2}"

    print("KERNEL_OK")
</pallas_src>

<mosaic_0001>
module attributes {stable_mosaic.version = 11 : i64} {
  func.func @_linear_kernel(%arg0: i32, %arg1: memref<16x32xf32, #tpu.memory_space<vmem>>, %arg2: memref<32x96xf32, #tpu.memory_space<vmem>>, %arg3: memref<1x96xf32, #tpu.memory_space<vmem>>, %arg4: memref<16x96xf32, #tpu.memory_space<vmem>>) attributes {dimension_semantics = [#tpu.dimension_semantics<parallel>], iteration_bounds = array<i64: 1>, scalar_prefetch = 0 : i64, scratch_operands = 0 : i64, tpu.core_type = #tpu.core_type<tc>, window_params = [{transform_indices = @transform_0, window_bounds = array<i64: 16, 32>}, {pipeline_mode = #tpu.pipeline_mode<synchronous>, transform_indices = @transform_1, window_bounds = array<i64: 32, 96>}, {pipeline_mode = #tpu.pipeline_mode<synchronous>, transform_indices = @transform_2, window_bounds = array<i64: 1, 96>}, {transform_indices = @transform_3, window_bounds = array<i64: 16, 96>}]} {
    %c0 = arith.constant 0 : index
    %c0_0 = arith.constant 0 : index
    %0 = vector.load %arg1[%c0, %c0_0] : memref<16x32xf32, #tpu.memory_space<vmem>>, vector<16x32xf32>
    %c0_1 = arith.constant 0 : index
    %c0_2 = arith.constant 0 : index
    %1 = vector.load %arg2[%c0_1, %c0_2] : memref<32x96xf32, #tpu.memory_space<vmem>>, vector<32x96xf32>
    %cst = arith.constant dense<0.000000e+00> : vector<16x96xf32>
    %2 = tpu.matmul %0, %1, %cst {dimension_numbers = #tpu.dot_dimension_numbers<[1], [0], [0], [1], [0, 0, 1, 1], [], []>} : vector<16x32xf32>, vector<32x96xf32>, vector<16x96xf32> -> vector<16x96xf32>
    %c0_3 = arith.constant 0 : index
    %c0_4 = arith.constant 0 : index
    %3 = vector.load %arg3[%c0_3, %c0_4] : memref<1x96xf32, #tpu.memory_space<vmem>>, vector<1x96xf32>
    %4 = vector.broadcast %3 : vector<1x96xf32> to vector<16x96xf32>
    %5 = arith.addf %2, %4 : vector<16x96xf32>
    %c0_5 = arith.constant 0 : index
    %c0_6 = arith.constant 0 : index
    %6 = vector.load %arg4[%c0_5, %c0_6] : memref<16x96xf32, #tpu.memory_space<vmem>>, vector<16x96xf32>
    tpu.vector_store %arg4[%c0_5, %c0_6], %5 {strides = array<i32>} : memref<16x96xf32, #tpu.memory_space<vmem>>, vector<16x96xf32>,
    return
  }
  func.func @transform_0(%arg0: i32) -> (i32, i32) {
    %c0_i32 = arith.constant 0 : i32
    %c0_i32_0 = arith.constant 0 : i32
    return %arg0, %c0_i32 : i32, i32
  }
  func.func @transform_1(%arg0: i32) -> (i32, i32) {
    %c0_i32 = arith.constant 0 : i32
    %c0_i32_0 = arith.constant 0 : i32
    %c0_i32_1 = arith.constant 0 : i32
    return %c0_i32, %c0_i32_0 : i32, i32
  }
  func.func @transform_2(%arg0: i32) -> (i32, i32) {
    %c0_i32 = arith.constant 0 : i32
    %c0_i32_0 = arith.constant 0 : i32
    %c0_i32_1 = arith.constant 0 : i32
    return %c0_i32, %c0_i32_0 : i32, i32
  }
  func.func @transform_3(%arg0: i32) -> (i32, i32) {
    %c0_i32 = arith.constant 0 : i32
    %c0_i32_0 = arith.constant 0 : i32
    return %arg0, %c0_i32 : i32, i32
  }
}

</mosaic_0001>

<bundles_post_ra>
// kernel: tpu_custom_call.1
= control target key start
LH: loop header
LB: loop body
LE: loop exit
PB: predicated region body
PF: predicated region fallthrough
CT: control target
= control target key end

     0   :  { %8 = vsyncpa [#allocation3], 0  ;;  %s246_s0 = inlined_call_operand.hbm [shape: f32[16,32], index: 0, kind: input, shape index: {}]   ;;  %s247_s1 = inlined_call_operand.hbm [shape: f32[32,96], index: 1, kind: input, shape index: {}]   ;;  %s248_s2 = inlined_call_operand.vmem [shape: f32[1,96], index: 2, kind: input, shape index: {}]   ;;  %s249_s3 = inlined_call_operand.hbm [shape: f32[16,96], index: 3, kind: output, shape index: {}]  }
   0x1   :  { %9 = vsyncpa [#allocation6], 0 }
   0x2   :  { %10 = vsyncpa [#allocation4], 0  ;;  %s15_s14 = sshll.u32 %s246_s0, 4  ;;  %s200_s15 = smov [#allocation2]   ;;  %s16_s14 = int_to_ptr.hbm [resolvable:$true] %s15_s14 }
   0x3   :  { %s17_s16 = sshll.u32 %s200_s15, 4  ;;  %s28_s19 = sshll.u32 %s247_s1, 4  ;;  %s18_s16 = int_to_ptr.vmem [resolvable:$true] %s17_s16  ;;  %s29_s19 = int_to_ptr.hbm [resolvable:$true] %s28_s19 }
   0x4   :  { %s201_s20 = smov 128   ;;  %s202_s21 = smov 8  }
   0x5   :  { %23 = dma.hbm_to_vmem [thread:$0]  %s16_s14, 256, %s18_s16, [#allocation3], %s201_s20, %s201_s20, %s202_s21  }
   0x6   :  { %s203_s22 = smov [#allocation5]  }
   0x7   :  { %s30_s23 = sshll.u32 %s203_s22, 4  ;;  %s31_s23 = int_to_ptr.vmem [resolvable:$true] %s30_s23 }
   0x8   :  { %36 = dma.hbm_to_vmem [thread:$0]  %s29_s19, 512, %s31_s23, [#allocation6], %s201_s20, %s201_s20, %s202_s21  }
   0x9   :  { %194 = dma.done.wait [#allocation3], 256  }
   0xa   :  { %195 = vsyncadd [#allocation3], 4294967040 }
   0xb   :  { %196 = dma.done.wait [#allocation6], 512  }
   0xc   :  { %197 = vsyncadd [#allocation6], 4294966784  ;;  %v52_v0 = vld [vmem:[#allocation5 + $0x18] sm:$0xff]  ;;  %v51_v1 = vld [vmem:[#allocation5 + $0x10] sm:$0xff]  ;;  %vm57_vm0 = vcmask 261120   ;;  %s204_s24 = smov [#allocation7]  }
   0xd   :  { %76 = vmatpush.msra.mxu0 %v52_v0  ;;  %112 = vmatpush.msra.mxu1 %v52_v0  ;;  %v50_v2 = vld [vmem:[#allocation5 + $0x8] sm:$0xff]  ;;  %v49_v3 = vld [vmem:[#allocation5] sm:$0xff]  ;;  %v47_v4 = vld [vmem:[#allocation2] sm:$0xff]  ;;  %s94_s25 = sshll.u32 %s204_s24, 4  ;;  %s96_s28 = sshll.u32 %s249_s3, 4  ;;  %vm87_vm1 = vcmask 785408   ;;  %s95_s25 = int_to_ptr.vmem [resolvable:$true] %s94_s25  ;;  %s97_s28 = int_to_ptr.hbm [resolvable:$true] %s96_s28 }
   0xe   :  { %v48_v5 = vld [vmem:[#allocation2 + $0x8] sm:$0xff]  ;;  %v121_v6 = vld [vmem:[%s248_s2] ss:$0 sm:$0xff] }
   0xf   :  { %77 = vmatpush.msra.mxu0 %v51_v1  ;;  %113 = vmatpush.msra.mxu1 %v51_v1 }
  0x11   :  { %78 = vmatpush.msra.mxu0 %v50_v2  ;;  %114 = vmatpush.msra.mxu1 %v50_v2 }
  0x13   :  { %79 = vmatpush.msra.mxu0 %v49_v3  ;;  %115 = vmatpush.msra.mxu1 %v49_v3 }
  0x14   :  { %110 = vmatmul.msk.f32.vlgmr.msra.gmra.mxu0 %vm57_vm0, %v47_v4  ;;  %111 = vmatmul.msk.f32.vlgmr.msra.gmra.mxu1 %vm57_vm0, %v48_v5 }
  0x91   :  { %v81_v7 = vpop.f32.mrf.mxu0  ;;  %v84_v8 = vpop.f32.mrf.mxu1 }
  0x92   :  { %v82_v9 = vadd.f32 %v121_v6, %v81_v7  ;;  %v85_v10 = vadd.f32 %v121_v6, %v84_v8 }
  0x94   :  { %88 = vst.msk [vmem:[#allocation7] sm:$0xff] %vm87_vm1, %v82_v9 }
  0x95   :  { %89 = vst.msk [vmem:[#allocation7 + $0x8] sm:$0xff] %vm87_vm1, %v85_v10 }
  0x96   :  { %102 = dma.vmem_to_hbm [thread:$0]  %s95_s25, 256, %s97_s28, [#allocation4], %s201_s20, %s201_s20, %s202_s21  }
  0x97   :  { %198 = dma.done.wait [#allocation4], 256  }
  0x98   :  { %199 = vsyncadd [#allocation4], 4294967040 }
  0x99   :  { %107 = vsyncpa [#allocation3], 1 }
  0x9a   :  { %108 = vsyncpa [#allocation6], 1 }
  0x9b   :  { %109 = vsyncpa [#allocation4], 1 }

</bundles_post_ra>
